<compile_context>
chip_gen: v6e
topology: v6e:2x2x1
jax: 0.10.0
libtpu: 0.0.40
codegen_flags: <defaults>
</compile_context>

<pallas_src>
from functools import partial

import numpy as np
import jax
import jax.numpy as jnp
from jax import lax
from jax.experimental import pallas as pl
from jax.experimental.pallas import tpu as pltpu


def _rup(x, m):
    return ((x + m - 1) // m) * m


# ----------------------------------------------------------------------------
# One-time probe: direction convention of pltpu.roll on this backend.
#   True  -> pltpu.roll(x, s) == jnp.roll(x, s)   (result[i] = x[(i - s) % n])
#   False -> opposite direction                    (result[i] = x[(i + s) % n])
# ----------------------------------------------------------------------------
def probe_roll_is_jnp_like():
    def k(x_ref, o_ref):
        o_ref[...] = pltpu.roll(x_ref[...], 1, axis=1)

    x = lax.broadcasted_iota(jnp.float32, (8, 128), 1)
    y = pl.pallas_call(k, out_shape=jax.ShapeDtypeStruct((8, 128), jnp.float32))(x)
    v = float(np.asarray(y)[0, 0])
    assert v in (127.0, 1.0), f"unexpected roll probe value {v}"
    return v == 127.0


# ----------------------------------------------------------------------------
# Fused forward kernel: all 14 conv layers, activations resident in VMEM.
# Layout: channels on sublanes, flattened zero-padded space on lanes.
# ----------------------------------------------------------------------------
def _fused_ae_kernel(x_ref, mask_ref, w_ref, b_ref, out_ref, *,
                     meta, sh, sd, roll_jnp_like):
    cm = x_ref.shape[0]          # padded channel count (uniform across layers)
    n = x_ref.shape[1]           # per-batch lane width (multiple of 128)

    def shift(v, delta):
        # result[..., q] = v[..., q + delta]; circular, but wraps only ever hit
        # masked halo/tail lanes (asserted in the wrapper).
        if delta % n == 0:
            return v
        s = (-delta) % n if roll_jnp_like else delta % n
        return pltpu.roll(v, s, axis=v.ndim - 1)

    mask = mask_ref[...]                           # [1, n] f32, 1.0 at interior
    h = x_ref[...]                                 # [cm, n] f32, zero halos

    for li, (relu, apply_mask) in enumerate(meta):
        # Fused im2col along the lane (W) axis only; rows ordered (kw, ci).
        u = jnp.concatenate(
            [shift(h, kw - 1).astype(jnp.bfloat16) for kw in range(3)], axis=0)
        # Single MXU pass per layer: LHS [9*cm, 3*cm], rows ordered (kd, kh, co).
        y9 = jnp.dot(w_ref[li], u, preferred_element_type=jnp.float32)
        acc = None
        for kd in range(3):
            for kh in range(3):
                r0 = (kd * 3 + kh) * cm
                blk = shift(y9[r0:r0 + cm, :], (kd - 1) * sd + (kh - 1) * sh)
                acc = blk if acc is None else acc + blk
        acc = acc + b_ref[li]                      # bias [cm, 1], lane broadcast
        if relu:
            acc = jnp.maximum(acc, 0.0)
        if apply_mask:                             # skipped on the last layer
            acc = acc * mask                       # re-zero halos + lane tail
        h = acc
    out_ref[...] = h


# ----------------------------------------------------------------------------
# Wrapper: NCDHW <-> [Cm, batch-blocked flattened padded space] + pallas_call
# ----------------------------------------------------------------------------
def conv_autoencoder_forward(x_ncdhw, w_all, b_all, meta, roll_jnp_like):
    B, C, D, H, W = x_ncdhw.shape
    cm = w_all.shape[2] // 3
    Dp, Hp, Wp = D + 2, H + 2, W + 2
    sh, sd = Wp, Hp * Wp
    Pb = Dp * Hp * Wp                 # per-batch padded spatial slab
    Pbp = _rup(Pb, 128)               # lane-aligned per-batch block

    # Circular lane shifts must never wrap an interior voxel back into the
    # interior of the same (or another) batch block.
    max_off = sd + sh + 1
    assert (sd + sh + 1) - max_off >= 0                 # lowest interior lane
    assert D * sd + H * sh + W + max_off < Pb <= Pbp    # highest interior lane

    xt = jnp.transpose(x_ncdhw, (1, 0, 2, 3, 4)).astype(jnp.float32)
    xp = jnp.pad(xt, ((0, cm - C), (0, 0), (1, 1), (1, 1), (1, 1)))
    x_flat = jnp.pad(xp.reshape(cm, B, Pb), ((0, 0), (0, 0), (0, Pbp - Pb)))
    x_flat = x_flat.reshape(cm, B * Pbp)

    interior = jnp.pad(jnp.ones((D, H, W), jnp.float32),
                       ((1, 1), (1, 1), (1, 1)))
    mask = jnp.pad(interior.reshape(1, Pb), ((0, 0), (0, Pbp - Pb)))

    kernel = partial(_fused_ae_kernel, meta=meta, sh=sh, sd=sd,
                     roll_jnp_like=roll_jnp_like)
    out_flat = pl.pallas_call(
        kernel,
        out_shape=jax.ShapeDtypeStruct((cm, B * Pbp), jnp.float32),
        grid=(B,),
        in_specs=[
            pl.BlockSpec((cm, Pbp), lambda b: (0, b)),      # per-batch lanes
            pl.BlockSpec((1, Pbp), lambda b: (0, 0)),       # mask (shared)
            pl.BlockSpec(w_all.shape, lambda b: (0, 0, 0)), # packed weights
            pl.BlockSpec(b_all.shape, lambda b: (0, 0, 0)), # packed biases
        ],
        out_specs=pl.BlockSpec((cm, Pbp), lambda b: (0, b)),
        compiler_params=pltpu.CompilerParams(
            dimension_semantics=("parallel",),
            vmem_limit_bytes=32 * 1024 * 1024),
    )(x_flat, mask, w_all, b_all)

    y = out_flat.reshape(cm, B, Pbp)[:C, :, :Pb]
    y = y.reshape(C, B, Dp, Hp, Wp)[:, :, 1:-1, 1:-1, 1:-1]
    return jnp.transpose(y, (1, 0, 2, 3, 4))


# ----------------------------------------------------------------------------
# Parameters (PyTorch Conv3d default init) + kernel-friendly repacking
# ----------------------------------------------------------------------------
def _conv_params(key, cin, cout, k):
    fan_in = cin * k * k * k
    bound = 1.0 / np.sqrt(fan_in)
    kw_, kb_ = jax.random.split(key)
    w = jax.random.uniform(kw_, (cout, cin, k, k, k), jnp.float32, -bound, bound)
    b = jax.random.uniform(kb_, (cout,), jnp.float32, -bound, bound)
    return w, b


def build_conv_autoencoder_params(key, dim, dim_mults, channels, z_channels):
    dims = [dim * m for m in dim_mults]
    assert len(dims) == 2, "this build path assumes dim_mults of length 2"
    d_lo, d_hi = dims

    # (cin, cout, kernel, relu_after): Encoder.forward then Decoder.forward;
    # with a single in_out pair only the `is_last` Conv3d branches are taken.
    layer_defs = [
        (channels, d_lo, 1, False),    # enc init_conv
        (d_lo, d_lo, 3, True),         # enc downs: BasicBlock
        (d_lo, d_lo, 3, True),         # enc downs: BasicBlock
        (d_lo, d_hi, 3, False),        # enc downs: is_last Conv3d
        (d_hi, d_hi, 3, True),         # enc mid_block_1
        (d_hi, d_hi, 3, True),         # enc mid_block_2
        (d_hi, z_channels, 3, False),  # enc final_block
        (z_channels, d_hi, 3, False),  # dec init_conv
        (d_hi, d_hi, 3, True),         # dec ups: BasicBlock
        (d_hi, d_hi, 3, True),         # dec ups: BasicBlock
        (d_hi, d_lo, 3, False),        # dec ups: is_last Conv3d
        (d_lo, d_lo, 3, True),         # dec mid_block_1
        (d_lo, d_lo, 3, True),         # dec mid_block_2
        (d_lo, channels, 3, False),    # dec final_block
    ]
    keys = jax.random.split(key, len(layer_defs))
    layers = []
    for lk, (cin, cout, k, relu) in zip(keys, layer_defs):
        w, b = _conv_params(lk, cin, cout, k)
        layers.append({"w": w, "b": b, "k": k, "relu": relu})
    return layers


def pack_layers(layers, cm):
    """Pack all layers into one weight slab [L, 9*cm, 3*cm] (bf16) and one
    bias slab [L, cm, 1] (f32); k=1 convs become 3x3x3 with zero off-center
    taps so every layer uses the same kernel code path."""
    wmats, bcols, meta = [], [], []
    L = len(layers)
    for i, p in enumerate(layers):
        w, b, k = p["w"], p["b"], p["k"]
        cout, cin = w.shape[0], w.shape[1]
        wf = jnp.zeros((cm, cm, 3, 3, 3), jnp.float32)
        if k == 3:
            wf = wf.at[:cout, :cin].set(w)
        else:
            wf = wf.at[:cout, :cin, 1, 1, 1].set(w[:, :, 0, 0, 0])
        # rows ordered (kd, kh, co), cols ordered (kw, ci) -> [9*cm, 3*cm]
        wmats.append(jnp.transpose(wf, (2, 3, 0, 4, 1)).reshape(9 * cm, 3 * cm))
        bcols.append(jnp.zeros((cm,), jnp.float32).at[:cout].set(b))
        meta.append((bool(p["relu"]), i < L - 1))   # (relu, apply_mask)
    w_all = jnp.stack(wmats).astype(jnp.bfloat16)   # [L, 9*cm, 3*cm]
    b_all = jnp.stack(bcols).reshape(L, cm, 1)      # [L, cm, 1]
    return w_all, b_all, tuple(meta)


# ----------------------------------------------------------------------------
# Pure-XLA reference (for numerical validation of the fused kernel)
# ----------------------------------------------------------------------------
def reference_forward(x, layers):
    h = x
    for p in layers:
        pad = 1 if p["k"] == 3 else 0
        h = lax.conv_general_dilated(
            h, p["w"], window_strides=(1, 1, 1), padding=[(pad, pad)] * 3,
            dimension_numbers=("NCDHW", "OIDHW", "NCDHW"),
            precision=lax.Precision.HIGHEST)
        h = h + p["b"].reshape(1, -1, 1, 1, 1)
        if p["relu"]:
            h = jnp.maximum(h, 0.0)
    return h


# ----------------------------------------------------------------------------
if __name__ == "__main__":
    dim, dim_mults, channels, z_channels = 8, (1, 2), 3, 4   # block_type = 0
    B, S = 2, 8   # batch, spatial (D = H = W = S)

    key = jax.random.PRNGKey(0)
    k_params, k_input = jax.random.split(key)
    layers = build_conv_autoencoder_params(k_params, dim, dim_mults,
                                           channels, z_channels)
    max_ch = max(max(p["w"].shape[0], p["w"].shape[1]) for p in layers)
    cm = _rup(max_ch, 16)   # 16: bf16 sublane-tile aligned uniform channel pad
    w_all, b_all, meta = pack_layers(layers, cm)

    x = jax.random.normal(k_input, (B, channels, S, S, S), jnp.float32)

    roll_jnp_like = probe_roll_is_jnp_like()   # eager, before tracing fwd

    fwd = jax.jit(lambda inp: conv_autoencoder_forward(
        inp, w_all, b_all, meta, roll_jnp_like))
    out = fwd(x)
    jax.block_until_ready(out)

    assert out.shape == (B, channels, S, S, S), out.shape
    assert out.dtype == jnp.float32

    ref = reference_forward(x, layers)
    np.testing.assert_allclose(np.asarray(out), np.asarray(ref),
                               rtol=2e-2, atol=2e-2)
    print("KERNEL_OK")
</pallas_src>

<mosaic_0001>
module attributes {stable_mosaic.version = 11 : i64} {
  func.func @k(%arg0: memref<8x128xf32, #tpu.memory_space<vmem>>, %arg1: memref<8x128xf32, #tpu.memory_space<vmem>>) attributes {dimension_semantics = [], scalar_prefetch = 0 : i64, scratch_operands = 0 : i64, tpu.core_type = #tpu.core_type<tc>} {
    %c0 = arith.constant 0 : index
    %c0_0 = arith.constant 0 : index
    %0 = vector.load %arg0[%c0, %c0_0] : memref<8x128xf32, #tpu.memory_space<vmem>>, vector<8x128xf32>
    %c1_i32 = arith.constant 1 : i32
    %1 = tpu.dynamic_rotate %0 by %c1_i32 dim 1 : vector<8x128xf32>, i32 -> vector<8x128xf32>
    %c0_1 = arith.constant 0 : index
    %c0_2 = arith.constant 0 : index
    %2 = vector.load %arg1[%c0_1, %c0_2] : memref<8x128xf32, #tpu.memory_space<vmem>>, vector<8x128xf32>
    tpu.vector_store %arg1[%c0_1, %c0_2], %1 {strides = array<i32>} : memref<8x128xf32, #tpu.memory_space<vmem>>, vector<8x128xf32>,
    return
  }
}

</mosaic_0001>

<bundles_post_ra>
// kernel: tpu_custom_call.1
= control target key start
LH: loop header
LB: loop body
LE: loop exit
PB: predicated region body
PF: predicated region fallthrough
CT: control target
= control target key end

     0   :  { %6 = vsyncpa [#allocation3], 0  ;;  %s106_s0 = inlined_call_operand.hbm [shape: f32[8,128], index: 0, kind: input, shape index: {}]   ;;  %s107_s1 = inlined_call_operand.hbm [shape: f32[8,128], index: 1, kind: output, shape index: {}]  }
   0x1   :  { %7 = vsyncpa [#allocation4], 0  ;;  %s87_s6 = smov [#allocation2]  }
   0x2   :  { %s14_s7 = sshll.u32 %s87_s6, 4  ;;  %s15_s7 = int_to_ptr.vmem [resolvable:$true] %s14_s7 }
   0x3   :  { %s51_s8 = scalar_lea.vmem %s15_s7, 128  ;;  %p56_p1 = scmp.lt.s32.totalorder %s15_s7, %s15_s7 }
   0x4   :  { %p52_p0 = scmp.ne.s32.totalorder %s15_s7, %s51_s8  ;;  %p57_p2 = scmp.lt.s32.totalorder %s51_s8, %s51_s8 }
   0x6   :  { %p58_p3 = por %p57_p2, %p56_p1 }
   0x8   :  { %p59_p4 = pnand %p58_p3, %p52_p0 }
   0xa   :  { %62 = shalt.err (!%p59_p4)
}
   0xb   :  { %17 = dma.hbm_to_vmem [thread:$0]  %s106_s0, 128, %s15_s7, [#allocation3]  }
   0xc   :  { %83 = dma.done.wait [#allocation3], 128  }
   0xd   :  { %84 = vsyncadd [#allocation3], 4294967168  ;;  %v21_v0 = vld [vmem:[#allocation2] sm:$0xff]  ;;  %s88_s11 = smov 1   ;;  %s89_s12 = smov [#allocation5]  }
   0xe   :  { %22 = vrot.lane.b32.xlu0 %v21_v0, %s88_s11  ;;  %s31_s13 = sshll.u32 %s89_s12, 4  ;;  %s32_s13 = int_to_ptr.vmem [resolvable:$true] %s31_s13 }
   0xf   :  { %s63_s14 = scalar_lea.vmem %s32_s13, 128  ;;  %p68_p6 = scmp.lt.s32.totalorder %s32_s13, %s32_s13 }
  0x10   :  { %p64_p5 = scmp.ne.s32.totalorder %s32_s13, %s63_s14  ;;  %p69_p7 = scmp.lt.s32.totalorder %s63_s14, %s63_s14 }
  0x12   :  { %p70_p8 = por %p69_p7, %p68_p6 }
  0x14   :  { %p71_p9 = pnand %p70_p8, %p64_p5 }
  0x80   :  { %v23_v1 = vpop.permute.xlu0 %22 }
  0x81   :  { %24 = vst [vmem:[#allocation5] sm:$0xff] %v23_v1 }
  0x82   :  { %74 = shalt.err (!%p71_p9)
}
  0x83   :  { %34 = dma.vmem_to_hbm [thread:$0]  %s32_s13, 128, %s107_s1, [#allocation4]  }
  0x84   :  { %85 = dma.done.wait [#allocation4], 128  }
  0x85   :  { %86 = vsyncadd [#allocation4], 4294967168 }
  0x86   :  { %38 = vsyncpa [#allocation3], 1 }
  0x87   :  { %39 = vsyncpa [#allocation4], 1 }

</bundles_post_ra>
